<compile_context>
chip_gen: v7x
topology: tpu7x:2x2x1
jax: 0.10.0
libtpu: 0.0.40
codegen_flags: <defaults>
</compile_context>

<pallas_src>
import functools

import jax
import jax.numpy as jnp
from jax.experimental import pallas as pl
from jax.experimental.pallas import tpu as pltpu

EPS = 1e-5


def _round_up(x, m):
    return (x + m - 1) // m * m


def _vmem_capacity_bytes():
    try:
        return int(pltpu.get_tpu_info().vmem_capacity_bytes)
    except Exception:  # query unavailable -> assume the smallest (v7x, 64 MiB)
        return 64 * 1024 * 1024


def _maybe_pad(a, rows, cols, dtype):
    """Pad to (rows, cols) and cast, skipping work when already aligned."""
    if a.shape != (rows, cols):
        a = jnp.pad(a, ((0, rows - a.shape[0]), (0, cols - a.shape[1])))
    if a.dtype != dtype:
        a = a.astype(dtype)
    return a


# --------------------------------------------------------------------------
# Fast path: the whole (padded) problem fits VMEM -> single invocation.
# --------------------------------------------------------------------------
def _fused_small_kernel(x_ref, w1_ref, gb_ref, w2_ref, b2_ref, o_ref, *, n_real):
    # lin1 without bias: b1 cancels under the BN mean subtraction.
    h = jnp.dot(x_ref[...], w1_ref[...], preferred_element_type=jnp.float32)

    inv_n = 1.0 / n_real
    mean = jnp.sum(h, axis=0, keepdims=True) * inv_n
    var = jnp.maximum(
        jnp.sum(h * h, axis=0, keepdims=True) * inv_n - mean * mean, 0.0)
    inv_std = jax.lax.rsqrt(var + EPS)

    # Folded BN affine: y = h * s + t
    s = inv_std * gb_ref[0:1, :]
    t = gb_ref[1:2, :] - mean * s
    y = jnp.maximum(h * s + t, 0.0)

    z = jnp.dot(y.astype(w2_ref.dtype), w2_ref[...],
                preferred_element_type=jnp.float32) + b2_ref[...]
    o_ref[...] = jnp.tanh(z)


# --------------------------------------------------------------------------
# Streaming fallback: one fused call, grid = (pass, row_tile).
#   pass 0: accumulate per-feature sum / sumsq; finalize folded (s, t) scratch.
#   pass 1: recompute lin1 per tile, apply y = h*s + t, ReLU, lin2 + b2, tanh.
# --------------------------------------------------------------------------
def _fused_stream_kernel(x_ref, w1_ref, gb_ref, w2_ref, b2_ref, o_ref,
                         acc_sum, acc_sq, st_ref, *, n_real):
    p = pl.program_id(0)
    i = pl.program_id(1)

    h = jnp.dot(x_ref[...], w1_ref[...], preferred_element_type=jnp.float32)

    @pl.when(p == 0)
    def _stats_pass():
        @pl.when(i == 0)
        def _init():
            acc_sum[...] = jnp.zeros_like(acc_sum)
            acc_sq[...] = jnp.zeros_like(acc_sq)

        acc_sum[...] += jnp.sum(h, axis=0, keepdims=True)
        acc_sq[...] += jnp.sum(h * h, axis=0, keepdims=True)

        @pl.when(i == pl.num_programs(1) - 1)
        def _finalize():
            inv_n = 1.0 / n_real
            mean = acc_sum[...] * inv_n
            var = jnp.maximum(acc_sq[...] * inv_n - mean * mean, 0.0)
            inv_std = jax.lax.rsqrt(var + EPS)
            s = inv_std * gb_ref[0:1, :]
            st_ref[0:1, :] = s
            st_ref[1:2, :] = gb_ref[1:2, :] - mean * s

    @pl.when(p == 1)
    def _apply_pass():
        y = jnp.maximum(h * st_ref[0:1, :] + st_ref[1:2, :], 0.0)
        z = jnp.dot(y.astype(w2_ref.dtype), w2_ref[...],
                    preferred_element_type=jnp.float32) + b2_ref[...]
        o_ref[...] = jnp.tanh(z)


def model_forward(x, w1, b1, gamma, beta, w2, b2, *,
                  matmul_dtype=jnp.float32, block_n=None,
                  force_streaming=False):
    """Forward pass of the Model. w1/w2 are PyTorch-layout (out, in)."""
    del b1  # mathematically cancelled by training-mode BatchNorm

    n, f_in = x.shape
    f_hid = w1.shape[0]
    f_out = w2.shape[0]
    f32 = jnp.float32

    # ---- generation-aware sizing ----
    cap = _vmem_capacity_bytes()
    vmem_limit = int(min(cap * 3 // 4, 100 * 1024 * 1024))
    if block_n is None:
        block_n = 1024 if cap >= 96 * 1024 * 1024 else 512

    sub = 16 if matmul_dtype == jnp.bfloat16 else 8  # sublane packing
    esize = jnp.dtype(matmul_dtype).itemsize

    fi_p = _round_up(f_in, 128)
    fh_p = _round_up(f_hid, 128)
    fo_p = _round_up(f_out, 128)

    # ---- one-time layout plumbing (small tensors always padded) ----
    w1p = _maybe_pad(w1.T.astype(f32), fi_p, fh_p, matmul_dtype)   # (in, out)
    w2p = _maybe_pad(w2.T.astype(f32), fh_p, fo_p, matmul_dtype)   # (in, out)
    gb = jnp.concatenate(
        [_maybe_pad(gamma.reshape(1, -1).astype(f32), 1, fh_p, f32),
         _maybe_pad(beta.reshape(1, -1).astype(f32), 1, fh_p, f32)],
        axis=0)                                                    # (2, fh_p)
    b2p = _maybe_pad(b2.reshape(1, -1).astype(f32), 1, fo_p, f32)  # (1, fo_p)

    weight_bytes = (fi_p * fh_p + fh_p * fo_p) * esize + (3 * fh_p + fo_p) * 4

    # ---- fast path: everything resident in VMEM, single invocation ----
    n_small = _round_up(max(n, 1), sub)
    small_bytes = (n_small * fi_p * esize          # x
                   + n_small * fo_p * 4            # out
                   + 2 * n_small * fh_p * 4        # h / y intermediates
                   + weight_bytes)
    if not force_streaming and small_bytes <= vmem_limit // 2:
        xp = _maybe_pad(x, n_small, fi_p, matmul_dtype)
        out_p = pl.pallas_call(
            functools.partial(_fused_small_kernel, n_real=float(n)),
            out_shape=jax.ShapeDtypeStruct((n_small, fo_p), f32),
            grid=(1,),
            in_specs=[
                pl.BlockSpec((n_small, fi_p), lambda i: (0, 0)),
                pl.BlockSpec((fi_p, fh_p), lambda i: (0, 0)),
                pl.BlockSpec((2, fh_p), lambda i: (0, 0)),
                pl.BlockSpec((fh_p, fo_p), lambda i: (0, 0)),
                pl.BlockSpec((1, fo_p), lambda i: (0, 0)),
            ],
            out_specs=pl.BlockSpec((n_small, fo_p), lambda i: (0, 0)),
            compiler_params=pltpu.CompilerParams(
                dimension_semantics=("arbitrary",),
                vmem_limit_bytes=vmem_limit),
        )(xp, w1p, gb, w2p, b2p)
        return out_p[:n, :f_out]

    # ---- streaming fallback: fused two-pass over row tiles ----
    tn = _round_up(min(block_n, _round_up(n, sub)), sub)

    def _tile_bytes(t):
        # 2x double-buffered x tile + 2x out tile + h/y intermediates
        # + resident weights + stats scratch.
        return (2 * t * fi_p * esize + 2 * t * fo_p * 4
                + 2 * t * fh_p * 4 + weight_bytes + 4 * fh_p * 4)

    while tn > sub and _tile_bytes(tn) > vmem_limit:
        tn = max(sub, _round_up(tn // 2, sub))

    n_p = _round_up(n, tn)
    xp = _maybe_pad(x, n_p, fi_p, matmul_dtype)

    grid = (2, n_p // tn)  # (pass, row_tile)
    out_p = pl.pallas_call(
        functools.partial(_fused_stream_kernel, n_real=float(n)),
        out_shape=jax.ShapeDtypeStruct((n_p, fo_p), f32),
        grid=grid,
        in_specs=[
            pl.BlockSpec((tn, fi_p), lambda p, i: (i, 0)),
            pl.BlockSpec((fi_p, fh_p), lambda p, i: (0, 0)),
            pl.BlockSpec((2, fh_p), lambda p, i: (0, 0)),
            pl.BlockSpec((fh_p, fo_p), lambda p, i: (0, 0)),
            pl.BlockSpec((1, fo_p), lambda p, i: (0, 0)),
        ],
        # Pass 0 pins the output on block 0 (never written there), pass 1
        # streams the real tiles -> no garbage writeback during pass 0.
        out_specs=pl.BlockSpec((tn, fo_p), lambda p, i: (p * i, 0)),
        scratch_shapes=[pltpu.VMEM((1, fh_p), f32),   # acc_sum
                        pltpu.VMEM((1, fh_p), f32),   # acc_sq
                        pltpu.VMEM((2, fh_p), f32)],  # folded (s, t)
        compiler_params=pltpu.CompilerParams(
            dimension_semantics=("arbitrary", "arbitrary"),
            vmem_limit_bytes=vmem_limit),
    )(xp, w1p, gb, w2p, b2p)
    return out_p[:n, :f_out]


def _reference(x, w1, b1, gamma, beta, w2, b2):
    y = x @ w1.T + b1
    mu = jnp.mean(y, axis=0, keepdims=True)
    var = jnp.mean((y - mu) ** 2, axis=0, keepdims=True)
    y = (y - mu) * jax.lax.rsqrt(var + EPS) * gamma + beta
    y = jnp.maximum(y, 0.0)
    return jnp.tanh(y @ w2.T + b2)


if __name__ == "__main__":
    N, F = 2, 2  # matches torch.randn(2, 2) and Linear(2, 2)

    key = jax.random.PRNGKey(0)
    kx, kw1, kb1, kw2, kb2, kx2 = jax.random.split(key, 6)

    x = jax.random.normal(kx, (N, F), dtype=jnp.float32)

    # Deterministic parameter init mimicking PyTorch Linear default:
    # uniform(-1/sqrt(in_features), 1/sqrt(in_features))
    bound = 1.0 / jnp.sqrt(jnp.float32(F))
    w1 = jax.random.uniform(kw1, (F, F), jnp.float32, -bound, bound)  # (out, in)
    b1 = jax.random.uniform(kb1, (F,), jnp.float32, -bound, bound)
    w2 = jax.random.uniform(kw2, (F, F), jnp.float32, -bound, bound)
    b2 = jax.random.uniform(kb2, (F,), jnp.float32, -bound, bound)

    # BatchNorm2d default init: gamma=1, beta=0
    gamma = jnp.ones((F,), jnp.float32)
    beta = jnp.zeros((F,), jnp.float32)

    # --- reference shape (exercises the fused single-call fast path) ---
    out = model_forward(x, w1, b1, gamma, beta, w2, b2)
    jax.block_until_ready(out)
    ref = _reference(x, w1, b1, gamma, beta, w2, b2)
    assert out.shape == (N, F), out.shape
    assert jnp.allclose(out, ref, atol=1e-4, rtol=1e-4), (out, ref)

    # --- larger batch (exercises the fused streaming two-pass fallback) ---
    N2 = 300
    x2 = jax.random.normal(kx2, (N2, F), dtype=jnp.float32)
    out2 = model_forward(x2, w1, b1, gamma, beta, w2, b2,
                         block_n=128, force_streaming=True)
    jax.block_until_ready(out2)
    ref2 = _reference(x2, w1, b1, gamma, beta, w2, b2)
    assert out2.shape == (N2, F), out2.shape
    assert jnp.allclose(out2, ref2, atol=1e-4, rtol=1e-4)

    print("KERNEL_OK")
</pallas_src>

<mosaic_0001>
module attributes {stable_mosaic.version = 11 : i64} {
  func.func @_fused_small_kernel(%arg0: i32, %arg1: memref<8x128xf32, #tpu.memory_space<vmem>>, %arg2: memref<128x128xf32, #tpu.memory_space<vmem>>, %arg3: memref<2x128xf32, #tpu.memory_space<vmem>>, %arg4: memref<128x128xf32, #tpu.memory_space<vmem>>, %arg5: memref<1x128xf32, #tpu.memory_space<vmem>>, %arg6: memref<8x128xf32, #tpu.memory_space<vmem>>) attributes {dimension_semantics = [#tpu.dimension_semantics<arbitrary>], iteration_bounds = array<i64: 1>, scalar_prefetch = 0 : i64, scratch_operands = 0 : i64, tpu.core_type = #tpu.core_type<tc>, window_params = [{pipeline_mode = #tpu.pipeline_mode<synchronous>, transform_indices = @transform_0, window_bounds = array<i64: 8, 128>}, {pipeline_mode = #tpu.pipeline_mode<synchronous>, transform_indices = @transform_1, window_bounds = array<i64: 128, 128>}, {pipeline_mode = #tpu.pipeline_mode<synchronous>, transform_indices = @transform_2, window_bounds = array<i64: 2, 128>}, {pipeline_mode = #tpu.pipeline_mode<synchronous>, transform_indices = @transform_3, window_bounds = array<i64: 128, 128>}, {pipeline_mode = #tpu.pipeline_mode<synchronous>, transform_indices = @transform_4, window_bounds = array<i64: 1, 128>}, {pipeline_mode = #tpu.pipeline_mode<synchronous>, transform_indices = @transform_5, window_bounds = array<i64: 8, 128>}]} {
    %c0 = arith.constant 0 : index
    %c0_0 = arith.constant 0 : index
    %0 = vector.load %arg1[%c0, %c0_0] : memref<8x128xf32, #tpu.memory_space<vmem>>, vector<8x128xf32>
    %c0_1 = arith.constant 0 : index
    %c0_2 = arith.constant 0 : index
    %1 = vector.load %arg2[%c0_1, %c0_2] : memref<128x128xf32, #tpu.memory_space<vmem>>, vector<128x128xf32>
    %cst = arith.constant dense<0.000000e+00> : vector<8x128xf32>
    %2 = tpu.matmul %0, %1, %cst {dimension_numbers = #tpu.dot_dimension_numbers<[1], [0], [0], [1], [0, 0, 1, 1], [], []>} : vector<8x128xf32>, vector<128x128xf32>, vector<8x128xf32> -> vector<8x128xf32>
    %cst_3 = arith.constant dense<0.000000e+00> : vector<128xf32>
    %3 = vector.multi_reduction <add>, %2, %cst_3 [0] : vector<8x128xf32> to vector<128xf32>
    %4 = vector.shape_cast %3 : vector<128xf32> to vector<1x128xf32>
    %cst_4 = arith.constant 5.000000e-01 : f32
    %5 = vector.broadcast %cst_4 : f32 to vector<1x128xf32>
    %6 = arith.mulf %4, %5 : vector<1x128xf32>
    %7 = arith.mulf %2, %2 : vector<8x128xf32>
    %cst_5 = arith.constant dense<0.000000e+00> : vector<128xf32>
    %8 = vector.multi_reduction <add>, %7, %cst_5 [0] : vector<8x128xf32> to vector<128xf32>
    %9 = vector.shape_cast %8 : vector<128xf32> to vector<1x128xf32>
    %cst_6 = arith.constant 5.000000e-01 : f32
    %10 = vector.broadcast %cst_6 : f32 to vector<1x128xf32>
    %11 = arith.mulf %9, %10 : vector<1x128xf32>
    %12 = arith.mulf %6, %6 : vector<1x128xf32>
    %13 = arith.subf %11, %12 : vector<1x128xf32>
    %cst_7 = arith.constant 0.000000e+00 : f32
    %14 = vector.broadcast %cst_7 : f32 to vector<1x128xf32>
    %15 = arith.maximumf %13, %14 : vector<1x128xf32>
    %cst_8 = arith.constant 9.99999974E-6 : f32
    %16 = vector.broadcast %cst_8 : f32 to vector<1x128xf32>
    %17 = arith.addf %15, %16 : vector<1x128xf32>
    %18 = math.rsqrt %17 : vector<1x128xf32>
    %c0_9 = arith.constant 0 : index
    %c0_10 = arith.constant 0 : index
    %19 = vector.load %arg3[%c0_9, %c0_10] : memref<2x128xf32, #tpu.memory_space<vmem>>, vector<1x128xf32>
    %20 = arith.mulf %18, %19 : vector<1x128xf32>
    %c1 = arith.constant 1 : index
    %c0_11 = arith.constant 0 : index
    %21 = vector.load %arg3[%c1, %c0_11] : memref<2x128xf32, #tpu.memory_space<vmem>>, vector<1x128xf32>
    %22 = arith.mulf %6, %20 : vector<1x128xf32>
    %23 = arith.subf %21, %22 : vector<1x128xf32>
    %24 = vector.broadcast %20 : vector<1x128xf32> to vector<8x128xf32>
    %25 = arith.mulf %2, %24 : vector<8x128xf32>
    %26 = vector.broadcast %23 : vector<1x128xf32> to vector<8x128xf32>
    %27 = arith.addf %25, %26 : vector<8x128xf32>
    %cst_12 = arith.constant 0.000000e+00 : f32
    %28 = vector.broadcast %cst_12 : f32 to vector<8x128xf32>
    %29 = arith.maximumf %27, %28 : vector<8x128xf32>
    %c0_13 = arith.constant 0 : index
    %c0_14 = arith.constant 0 : index
    %30 = vector.load %arg4[%c0_13, %c0_14] : memref<128x128xf32, #tpu.memory_space<vmem>>, vector<128x128xf32>
    %cst_15 = arith.constant dense<0.000000e+00> : vector<8x128xf32>
    %31 = tpu.matmul %29, %30, %cst_15 {dimension_numbers = #tpu.dot_dimension_numbers<[1], [0], [0], [1], [0, 0, 1, 1], [], []>} : vector<8x128xf32>, vector<128x128xf32>, vector<8x128xf32> -> vector<8x128xf32>
    %c0_16 = arith.constant 0 : index
    %c0_17 = arith.constant 0 : index
    %32 = vector.load %arg5[%c0_16, %c0_17] : memref<1x128xf32, #tpu.memory_space<vmem>>, vector<1x128xf32>
    %33 = vector.broadcast %32 : vector<1x128xf32> to vector<8x128xf32>
    %34 = arith.addf %31, %33 : vector<8x128xf32>
    %35 = math.tanh %34 : vector<8x128xf32>
    %c0_18 = arith.constant 0 : index
    %c0_19 = arith.constant 0 : index
    %36 = vector.load %arg6[%c0_18, %c0_19] : memref<8x128xf32, #tpu.memory_space<vmem>>, vector<8x128xf32>
    tpu.vector_store %arg6[%c0_18, %c0_19], %35 {strides = array<i32>} : memref<8x128xf32, #tpu.memory_space<vmem>>, vector<8x128xf32>,
    return
  }
  func.func @transform_0(%arg0: i32) -> (i32, i32) {
    %c0_i32 = arith.constant 0 : i32
    %c0_i32_0 = arith.constant 0 : i32
    %c0_i32_1 = arith.constant 0 : i32
    return %c0_i32, %c0_i32_0 : i32, i32
  }
  func.func @transform_1(%arg0: i32) -> (i32, i32) {
    %c0_i32 = arith.constant 0 : i32
    %c0_i32_0 = arith.constant 0 : i32
    %c0_i32_1 = arith.constant 0 : i32
    return %c0_i32, %c0_i32_0 : i32, i32
  }
  func.func @transform_2(%arg0: i32) -> (i32, i32) {
    %c0_i32 = arith.constant 0 : i32
    %c0_i32_0 = arith.constant 0 : i32
    %c0_i32_1 = arith.constant 0 : i32
    return %c0_i32, %c0_i32_0 : i32, i32
  }
  func.func @transform_3(%arg0: i32) -> (i32, i32) {
    %c0_i32 = arith.constant 0 : i32
    %c0_i32_0 = arith.constant 0 : i32
    %c0_i32_1 = arith.constant 0 : i32
    return %c0_i32, %c0_i32_0 : i32, i32
  }
  func.func @transform_4(%arg0: i32) -> (i32, i32) {
    %c0_i32 = arith.constant 0 : i32
    %c0_i32_0 = arith.constant 0 : i32
    %c0_i32_1 = arith.constant 0 : i32
    return %c0_i32, %c0_i32_0 : i32, i32
  }
  func.func @transform_5(%arg0: i32) -> (i32, i32) {
    %c0_i32 = arith.constant 0 : i32
    %c0_i32_0 = arith.constant 0 : i32
    %c0_i32_1 = arith.constant 0 : i32
    return %c0_i32, %c0_i32_0 : i32, i32
  }
}

</mosaic_0001>

<bundles_post_ra>
// kernel: tpu_custom_call.1
= control target key start
LH: loop header
LB: loop body
LE: loop exit
PB: predicated region body
PF: predicated region fallthrough
CT: control target
= control target key end

     0   :  { %10 = vsyncpa [#allocation3], 0  ;;  %s672_s0 = inlined_call_operand.hbm [shape: f32[8,128], index: 0, kind: input, shape index: {}]   ;;  %s673_s1 = inlined_call_operand.hbm [shape: f32[128,128], index: 1, kind: input, shape index: {}]   ;;  %s674_s2 = inlined_call_operand.vmem [shape: f32[2,128], index: 2, kind: input, shape index: {}]   ;;  %s675_s3 = inlined_call_operand.hbm [shape: f32[128,128], index: 3, kind: input, shape index: {}]   ;;  %s676_s4 = inlined_call_operand.vmem [shape: f32[1,128], index: 4, kind: input, shape index: {}]   ;;  %s677_s5 = inlined_call_operand.hbm [shape: f32[8,128], index: 5, kind: output, shape index: {}]  }
   0x1   :  { %11 = vsyncpa [#allocation6], 0 }
   0x2   :  { %12 = vsyncpa [#allocation4], 0  ;;  %s554_s18 = smov [#allocation5]   ;;  %s460_s22 = scalar_lea.hbm %s673_s1, 2048 }
   0x3   :  { %s28_s19 = sshll.u32 %s554_s18, 4  ;;  %p461_p0 = scmp.ne.s32.totalorder %s673_s1, %s460_s22  ;;  %s29_s19 = int_to_ptr.vmem [resolvable:$true] %s28_s19 }
   0x4   :  { %p464_p1 = scmp.lt.u32.totalorder %s460_s22, %s673_s1 }
   0x6   :  { %p466_p2 = pnand %p464_p1, %p461_p0 }
   0x8   :  { %469 = shalt.err (!%p466_p2)
}
   0x9   :  { %s470_s27 = scalar_lea.vmem %s29_s19, 2048  ;;  %p475_p4 = scmp.lt.s32.totalorder %s29_s19, %s29_s19 }
   0xa   :  { %p471_p3 = scmp.ne.s32.totalorder %s29_s19, %s470_s27  ;;  %p476_p5 = scmp.lt.s32.totalorder %s470_s27, %s470_s27 }
   0xc   :  { %p477_p6 = por %p476_p5, %p475_p4 }
   0xe   :  { %p478_p7 = pnand %p477_p6, %p471_p3 }
  0x10   :  { %481 = shalt.err (!%p478_p7)
}
  0x11   :  { %s555_s28 = smov 128   ;;  %s556_s29 = smov 8  }
  0x12   :  { %34 = dma.hbm_to_vmem [thread:$0]  %s673_s1, 2048, %s29_s19, [#allocation6], %s555_s28, %s555_s28, %s556_s29  }
  0x13   :  { %s557_s7 = smov [#allocation2]   ;;  %s558_s9 = smov [#allocation7]  }
  0x14   :  { %s19_s8 = sshll.u32 %s557_s7, 4  ;;  %s42_s10 = sshll.u32 %s558_s9, 4  ;;  %s20_s8 = int_to_ptr.vmem [resolvable:$true] %s19_s8  ;;  %s43_s10 = int_to_ptr.vmem [resolvable:$true] %s42_s10 }
  0x15   :  { %s482_s13 = scalar_lea.hbm %s672_s0, 128 }
  0x16   :  { %p483_p8 = scmp.ne.s32.totalorder %s672_s0, %s482_s13  ;;  %p486_p9 = scmp.lt.u32.totalorder %s482_s13, %s672_s0 }
  0x18   :  { %p488_p10 = pnand %p486_p9, %p483_p8 }
  0x1a   :  { %491 = shalt.err (!%p488_p10)
}
  0x1b   :  { %s492_s1 = scalar_lea.vmem %s20_s8, 128  ;;  %p497_p12 = scmp.lt.s32.totalorder %s20_s8, %s20_s8 }
  0x1c   :  { %p493_p11 = scmp.ne.s32.totalorder %s20_s8, %s492_s1  ;;  %p498_p13 = scmp.lt.s32.totalorder %s492_s1, %s492_s1 }
  0x1e   :  { %p499_p0 = por %p498_p13, %p497_p12 }
  0x20   :  { %p500_p1 = pnand %p499_p0, %p493_p11 }
  0x22   :  { %503 = shalt.err (!%p500_p1)
}
  0x23   :  { %22 = dma.hbm_to_vmem [thread:$0]  %s672_s0, 128, %s20_s8, [#allocation3]  }
  0x24   :  { %s504_s22 = scalar_lea.hbm %s675_s3, 2048 }
  0x25   :  { %p505_p2 = scmp.ne.s32.totalorder %s675_s3, %s504_s22  ;;  %p508_p3 = scmp.lt.u32.totalorder %s504_s22, %s675_s3 }
  0x27   :  { %p510_p4 = pnand %p508_p3, %p505_p2 }
  0x29   :  { %513 = shalt.err (!%p510_p4)
}
  0x2a   :  { %s514_s27 = scalar_lea.vmem %s43_s10, 2048  ;;  %p519_p6 = scmp.lt.s32.totalorder %s43_s10, %s43_s10 }
  0x2b   :  { %p515_p5 = scmp.ne.s32.totalorder %s43_s10, %s514_s27  ;;  %p520_p7 = scmp.lt.s32.totalorder %s514_s27, %s514_s27 }
  0x2d   :  { %p521_p8 = por %p520_p7, %p519_p6 }
  0x2f   :  { %p522_p9 = pnand %p521_p8, %p515_p5 }
  0x31   :  { %525 = shalt.err (!%p522_p9)
}
  0x32   :  { %48 = dma.hbm_to_vmem [thread:$0]  %s675_s3, 2048, %s43_s10, [#allocation6], %s555_s28, %s555_s28, %s556_s29  }
  0x33   :  { %548 = dma.done.wait [#allocation3], 128  }
  0x34   :  { %549 = vsyncadd [#allocation3], 4294967168 }
  0x35   :  { %550 = dma.done.wait [#allocation6], 4096  }
  0x36   :  { %551 = vsyncadd [#allocation6], 4294963200  ;;  %v559_v0 = vmov 0.0|0.0   ;;  %vm560_vm0 = vmmov 0   ;;  %v561_v1 = vmov 0.0   ;;  %v61_v2 = vld [vmem:[#allocation5] sm:$0xff] }
  0x37   :  { %399 = vmatprep.subr.bf16.mxu0 %v559_v0  ;;  %361 = vmatprep.mubr.msk.f32.mxu0 %vm560_vm0, %v561_v1  ;;  %v62_v3 = vld [vmem:[#allocation5 + $0x8] sm:$0xff]  ;;  %v63_v4 = vld [vmem:[#allocation5 + $0x10] sm:$0xff]  ;;  %v64_v6 = vld [vmem:[#allocation5 + $0x18] sm:$0xff]  ;;  %s562_s9 = smov [#allocation8]  }
  0x38   :  { %423 = vmatprep.subr.bf16.mxu1 %v559_v0  ;;  %396 = vmatprep.mubr.msk.f32.mxu1 %vm560_vm0, %v561_v1  ;;  %v400_v5 = vpack.c.bf16 %v62_v3, %v61_v2  ;;  %v403_v7 = vpack.c.bf16 %v64_v6, %v63_v4  ;;  %v65_v8 = vld [vmem:[#allocation5 + $0x20] sm:$0xff]  ;;  %v66_v9 = vld [vmem:[#allocation5 + $0x28] sm:$0xff]  ;;  %v67_v11 = vld [vmem:[#allocation5 + $0x30] sm:$0xff]  ;;  %s284_s10 = sshll.u32 %s562_s9, 4  ;;  %s285_s10 = int_to_ptr.vmem [resolvable:$true] %s284_s10 }
  0x39   :  { %v406_v10 = vpack.c.bf16 %v66_v9, %v65_v8  ;;  %v68_v12 = vld [vmem:[#allocation5 + $0x38] sm:$0xff]  ;;  %v69_v14 = vld [vmem:[#allocation5 + $0x40] sm:$0xff]  ;;  %v70_v15 = vld [vmem:[#allocation5 + $0x48] sm:$0xff]  ;;  %v172_v8 = vlaneseq  ;;  %p531_p11 = scmp.lt.s32.totalorder %s285_s10, %s285_s10 }
  0x3a   :  { %401 = vmatpush3.bf16.msra.mxu0 %v400_v5  ;;  %v409_v13 = vpack.c.bf16 %v68_v12, %v67_v11  ;;  %v412_v16 = vpack.c.bf16 %v70_v15, %v69_v14  ;;  %v71_v17 = vld [vmem:[#allocation5 + $0x50] sm:$0xff]  ;;  %v72_v18 = vld [vmem:[#allocation5 + $0x58] sm:$0xff]  ;;  %v73_v20 = vld [vmem:[#allocation5 + $0x60] sm:$0xff] }
  0x3b   :  { %402 = vmatprep.subr.bf16.mxu0 %v559_v0  ;;  %v415_v19 = vpack.c.bf16 %v72_v18, %v71_v17  ;;  %v74_v21 = vld [vmem:[#allocation5 + $0x68] sm:$0xff]  ;;  %v75_v23 = vld [vmem:[#allocation5 + $0x70] sm:$0xff]  ;;  %v76_v24 = vld [vmem:[#allocation5 + $0x78] sm:$0xff]  ;;  %v173_v9 = vshrl.u32 %v172_v8, 7 }
  0x3c   :  { %v418_v22 = vpack.c.bf16 %v74_v21, %v73_v20  ;;  %v421_v25 = vpack.c.bf16 %v76_v24, %v75_v23  ;;  %v60_v26 = vld [vmem:[#allocation2] sm:$0xff]  ;;  %v183_v27 = vld [vmem:[#allocation7] sm:$0xff]  ;;  %v184_v28 = vld [vmem:[#allocation7 + $0x8] sm:$0xff] }
  0x3d   :  { %v424_v29 = vpack.c.bf16 %v184_v28, %v183_v27  ;;  %v185_v30 = vld [vmem:[#allocation7 + $0x10] sm:$0xff]  ;;  %v186_v31 = vld [vmem:[#allocation7 + $0x18] sm:$0xff]  ;;  %v187_v33 = vld [vmem:[#allocation7 + $0x20] sm:$0xff]  ;;  %v174_v11 = vsub.s32 0, %v173_v9 }
  0x3e   :  { %404 = vmatpush3.bf16.msra.mxu0 %v403_v7  ;;  %v427_v32 = vpack.c.bf16 %v186_v31, %v185_v30  ;;  %v188_v34 = vld [vmem:[#allocation7 + $0x28] sm:$0xff]  ;;  %v189_v36 = vld [vmem:[#allocation7 + $0x30] sm:$0xff]  ;;  %v190_v37 = vld [vmem:[#allocation7 + $0x38] sm:$0xff] }
  0x3f   :  { %405 = vmatprep.subr.bf16.mxu0 %v559_v0  ;;  %425 = vmatpush3.bf16.msra.mxu1 %v424_v29  ;;  %v430_v35 = vpack.c.bf16 %v188_v34, %v187_v33  ;;  %v433_v38 = vpack.c.bf16 %v190_v37, %v189_v36  ;;  %v191_v39 = vld [vmem:[#allocation7 + $0x40] sm:$0xff]  ;;  %v192_v40 = vld [vmem:[#allocation7 + $0x48] sm:$0xff]  ;;  %v193_v42 = vld [vmem:[#allocation7 + $0x50] sm:$0xff] }
  0x40   :  { %426 = vmatprep.subr.bf16.mxu1 %v559_v0  ;;  %v436_v41 = vpack.c.bf16 %v192_v40, %v191_v39  ;;  %v194_v43 = vld [vmem:[#allocation7 + $0x58] sm:$0xff]  ;;  %v195_v45 = vld [vmem:[#allocation7 + $0x60] sm:$0xff]  ;;  %v196_v46 = vld [vmem:[#allocation7 + $0x68] sm:$0xff] }
  0x41   :  { %v439_v44 = vpack.c.bf16 %v194_v43, %v193_v42  ;;  %v442_v47 = vpack.c.bf16 %v196_v46, %v195_v45  ;;  %v197_v48 = vld [vmem:[#allocation7 + $0x70] sm:$0xff]  ;;  %v198_v49 = vld [vmem:[#allocation7 + $0x78] sm:$0xff] }
  0x42   :  { %407 = vmatpush3.bf16.msra.mxu0 %v406_v10  ;;  %v445_v50 = vpack.c.bf16 %v198_v49, %v197_v48  ;;  %v167_v10 = vld [vmem:[%s674_s2] sm:$0x1]  ;;  %v169_v14 = vld [vmem:[%s674_s2 + $0x1] sm:$0x1]  ;;  %s526_s2 = scalar_lea.vmem %s285_s10, 128 }
  0x43   :  { %408 = vmatprep.subr.bf16.mxu0 %v559_v0  ;;  %428 = vmatpush3.bf16.msra.mxu1 %v427_v32  ;;  %p527_p10 = scmp.ne.s32.totalorder %s285_s10, %s526_s2  ;;  %p532_p12 = scmp.lt.s32.totalorder %s526_s2, %s526_s2 }
  0x44   :  { %429 = vmatprep.subr.bf16.mxu1 %v559_v0 }
  0x45   :  { %p533_p13 = por %p532_p12, %p531_p11 }
  0x46   :  { %410 = vmatpush3.bf16.msra.mxu0 %v409_v13 }
  0x47   :  { %411 = vmatprep.subr.bf16.mxu0 %v559_v0  ;;  %431 = vmatpush3.bf16.msra.mxu1 %v430_v35  ;;  %p534_p0 = pnand %p533_p13, %p527_p10 }
  0x48   :  { %432 = vmatprep.subr.bf16.mxu1 %v559_v0 }
  0x4a   :  { %413 = vmatpush3.bf16.msra.mxu0 %v412_v16 }
  0x4b   :  { %414 = vmatprep.subr.bf16.mxu0 %v559_v0  ;;  %434 = vmatpush3.bf16.msra.mxu1 %v433_v38 }
  0x4c   :  { %435 = vmatprep.subr.bf16.mxu1 %v559_v0 }
  0x4e   :  { %416 = vmatpush3.bf16.msra.mxu0 %v415_v19 }
  0x4f   :  { %417 = vmatprep.subr.bf16.mxu0 %v559_v0  ;;  %437 = vmatpush3.bf16.msra.mxu1 %v436_v41 }
  0x50   :  { %438 = vmatprep.subr.bf16.mxu1 %v559_v0 }
  0x52   :  { %419 = vmatpush3.bf16.msra.mxu0 %v418_v22  ;;  %v294_v22 = vld [vmem:[%s676_s4] ss:$0 sm:$0xff] }
  0x53   :  { %420 = vmatprep.subr.bf16.mxu0 %v559_v0  ;;  %440 = vmatpush3.bf16.msra.mxu1 %v439_v44 }
  0x54   :  { %441 = vmatprep.subr.bf16.mxu1 %v559_v0 }
  0x56   :  { %422 = vmatpush3.bf16.msra.mxu0 %v421_v25 }
  0x57   :  { %443 = vmatpush3.bf16.msra.mxu1 %v442_v47 }
  0x58   :  { %444 = vmatprep.subr.bf16.mxu1 %v559_v0 }
  0x59   :  { %362 = vmatmul.mubr.f32.vlgmr.msra.gmra.mrb[0].mxu0 %v60_v26 }
  0x5b   :  { %446 = vmatpush3.bf16.msra.mxu1 %v445_v50 }
 0x12c   :  { %v143_v51 = vpop.f32.mrb[0].mxu0 }
 0x12d   :  { %v147_v52 = vrot.slane %v143_v51, 4  ;;  %v154_v53 = vmul.f32 %v143_v51, %v143_v51  ;;  %v363_v54 = vpop.f32.mrb[1].mxu0 }
 0x12f   :  { %v148_v55 = vadd.f32 %v147_v52, %v143_v51  ;;  %v155_v56 = vrot.slane %v154_v53, 4 }
 0x131   :  { %v149_v57 = vrot.slane %v148_v55, 2  ;;  %v156_v58 = vadd.f32 %v155_v56, %v154_v53 }
 0x133   :  { %v150_v59 = vadd.f32 %v149_v57, %v148_v55  ;;  %v157_v60 = vrot.slane %v156_v58, 2 }
 0x135   :  { %v151_v61 = vrot.slane %v150_v59, 1  ;;  %v158_v62 = vadd.f32 %v157_v60, %v156_v58 }
 0x137   :  { %v152_v63 = vadd.f32 %v151_v61, %v150_v59  ;;  %v159_v1 = vrot.slane %v158_v62, 1 }
 0x139   :  { %v153_v2 = vmul.f32 0.5, %v152_v63  ;;  %v160_v3 = vadd.f32 %v159_v1, %v158_v62 }
 0x13b   :  { %v161_v4 = vmul.f32 0.5, %v160_v3  ;;  %v162_v5 = vmul.f32 %v153_v2, %v153_v2 }
 0x13d   :  { %v163_v0 = vsub.f32 %v161_v4, %v162_v5 }
 0x13f   :  { %v164_v6 = vmax.f32 %v163_v0, 0.0 }
 0x141   :  { %v165_v7 = vadd.f32 1e-05, %v164_v6 }
 0x143   :  { %456 = vrsqrt.f32 %v165_v7 }
 0x14d   :  { %v457_v12 = vpop.eup %456 }
 0x14e   :  { %v168_v13 = vmul.f32 %v457_v12, %v167_v10 }
 0x150   :  { %v175_v15 = vrot.slane %v168_v13, %v174_v11  ;;  %v170_v16 = vmul.f32 %v168_v13, %v153_v2 }
 0x152   :  { %v171_v17 = vsub.f32 %v169_v14, %v170_v16  ;;  %v176_v18 = vmul.f32 %v175_v15, %v143_v51 }
 0x154   :  { %v180_v19 = vrot.slane %v171_v17, %v174_v11 }
 0x156   :  { %v181_v20 = vadd.f32 %v180_v19, %v176_v18 }
 0x158   :  { %v182_v21 = vmax.f32 %v181_v20, 0.0 }
 0x15a   :  { %397 = vmatmul.mubr.f32.vlgmr.msra.gmra.mrb[0].mxu1 %v182_v21 }
 0x22d   :  { %v272_v23 = vpop.f32.mrb[0].mxu1 }
 0x22e   :  { %v273_v24 = vadd.f32 %v294_v22, %v272_v23  ;;  %v398_v25 = vpop.f32.mrb[1].mxu1 }
 0x230   :  { %458 = vtanh.f32 %v273_v24 }
 0x23a   :  { %v459_v26 = vpop.eup %458 }
 0x23b   :  { %277 = vst [vmem:[#allocation8] sm:$0xff] %v459_v26 }
 0x23c   :  { %537 = shalt.err (!%p534_p0)
}
 0x23d   :  { %s538_s4 = scalar_lea.hbm %s677_s5, 128 }
 0x23e   :  { %p539_p1 = scmp.ne.s32.totalorder %s677_s5, %s538_s4  ;;  %p542_p2 = scmp.lt.u32.totalorder %s538_s4, %s677_s5 }
 0x240   :  { %p544_p3 = pnand %p542_p2, %p539_p1 }
 0x242   :  { %547 = shalt.err (!%p544_p3)
}
 0x243   :  { %287 = dma.vmem_to_hbm [thread:$0]  %s285_s10, 128, %s677_s5, [#allocation4]  }
 0x244   :  { %552 = dma.done.wait [#allocation4], 128  }
 0x245   :  { %553 = vsyncadd [#allocation4], 4294967168 }
 0x246   :  { %291 = vsyncpa [#allocation3], 1 }
 0x247   :  { %292 = vsyncpa [#allocation6], 1 }
 0x248   :  { %293 = vsyncpa [#allocation4], 1 }

</bundles_post_ra>
